<compile_context>
chip_gen: v7x
topology: tpu7x:2x2x1
jax: 0.10.0
libtpu: 0.0.40
codegen_flags: <defaults>
</compile_context>

<pallas_src>
import jax
import jax.numpy as jnp
from jax import lax
from jax.experimental import pallas as pl
from jax.experimental.pallas import tpu as pltpu

_LANE = 128
_SUBLANE = 8


def _round_up(x, m):
    return (x + m - 1) // m * m


def _tpu_generation_and_vmem():
    """Best-effort (TPU generation, physical VMEM bytes) with conservative fallbacks."""
    gen = None
    vmem = None
    try:
        vmem = int(pltpu.get_tpu_info().vmem_capacity_bytes)
    except Exception:
        vmem = None
    try:
        kind = jax.devices()[0].device_kind.lower()
        for g in (7, 6, 5, 4):
            if f"v{g}" in kind:
                gen = g
                break
    except Exception:
        gen = None
    if vmem is None:
        # 64 MiB is the smallest across v5e/v6e/v7x -> safe default when unknown.
        vmem = 64 * 1024 * 1024 if (gen is None or gen >= 7) else 128 * 1024 * 1024
    if gen is None:
        gen = 7 if vmem <= 64 * 1024 * 1024 else 6
    return gen, vmem


def _hint(idx, tile):
    """Alignment hint for a dynamic-slice start (only when it is truthfully aligned)."""
    if tile % _LANE == 0:
        return pl.multiple_of(idx, _LANE)
    if tile % _SUBLANE == 0:
        return pl.multiple_of(idx, _SUBLANE)
    return idx


def _make_resident_kernel(tm, tn, act_dtype):
    """o tile (i,j) = sigmoid(x[i*tm:(i+1)*tm] @ x[j*tn:(j+1)*tn].T); x fully VMEM-resident."""

    def kernel(x_ref, o_ref):
        a = x_ref[pl.ds(_hint(pl.program_id(0) * tm, tm), tm), :]
        b = x_ref[pl.ds(_hint(pl.program_id(1) * tn, tn), tn), :]
        logits = lax.dot_general(
            a, b,
            dimension_numbers=(((1,), (1,)), ((), ())),   # "nt": no in-kernel transpose
            preferred_element_type=jnp.float32,
        )
        o_ref[...] = jax.nn.sigmoid(logits.astype(act_dtype)).astype(o_ref.dtype)

    return kernel


def _make_streaming_kernel(act_dtype):
    """Pipelined variant: A row tile and B row tile are streamed by BlockSpecs."""

    def kernel(a_ref, b_ref, o_ref):
        logits = lax.dot_general(
            a_ref[...], b_ref[...],
            dimension_numbers=(((1,), (1,)), ((), ())),
            preferred_element_type=jnp.float32,
        )
        o_ref[...] = jax.nn.sigmoid(logits.astype(act_dtype)).astype(o_ref.dtype)

    return kernel


def inner_product_decoder(inp, *, compute_dtype=jnp.bfloat16, out_dtype=jnp.float32,
                          tm=None, tn=None, resident=None):
    """Pallas TPU InnerProductDecoder.forward: sigmoid(inp @ inp.T).

    compute_dtype: MXU operand dtype.  bfloat16 default; pass jnp.float32 as an
      exact-precision escape hatch (matches the PyTorch f32 matmul bit-for-bit closer).
    out_dtype: float32 matches the PyTorch module; bfloat16 halves the dominant N^2
      HBM writeback and is recommended when the consumer tolerates it.
    """
    N, D = inp.shape
    in_bytes = jnp.dtype(compute_dtype).itemsize
    out_bytes = jnp.dtype(out_dtype).itemsize

    gen, vmem_phys = _tpu_generation_and_vmem()
    # ~75% of physical VMEM as the Mosaic scoped limit, ~60% as our planning budget
    # (headroom for Mosaic-internal scratch on top of the f32 logits temp we count).
    vmem_limit = min(int(vmem_phys * 0.75), 100 * 1024 * 1024)
    vmem_budget = int(vmem_phys * 0.60)

    # bf16 EUP exists on v6e/v7x; keep the sigmoid in f32 on v5e and for f32 output.
    act_dtype = (jnp.bfloat16
                 if (jnp.dtype(out_dtype) == jnp.dtype(jnp.bfloat16) and gen >= 6)
                 else jnp.float32)

    # One cheap N*D cast pass; the N^2 output stream dominates total traffic.
    x = inp.astype(compute_dtype)

    # --- keep x fully resident in VMEM (single copy, no pipelining) when it fits ---
    x_vmem_bytes = _round_up(N, _LANE) * _round_up(D, _LANE) * in_bytes
    if resident is None:
        resident = x_vmem_bytes <= vmem_budget // 3

    # --- row tile tm (output sublane axis): largest legal tile -------------------
    if tm is None:
        tm = N if N <= 512 else 512          # full-dim tiles are always legal

    # --- column tile tn (output lane axis): as wide as the VMEM budget allows ----
    # Per output column: double-buffered out tile + f32 logits temp (+ small bf16
    # activation temp).  Non-resident additionally streams a (tn, D) B tile.
    if tn is None:
        per_col = tm * (2 * out_bytes + 4 + 2)
        fixed = x_vmem_bytes if resident else 2 * tm * D * in_bytes
        if not resident:
            per_col += 2 * D * in_bytes
        avail = max(vmem_budget - fixed, per_col * _LANE)
        tn_fit = avail // per_col
        tn = N if tn_fit >= N else max(_LANE, (tn_fit // _LANE) * _LANE)

    # v7x has 2 TensorCores: make sure the parallel grid has >= 2 steps so both
    # cores get work; single-TC chips keep the largest tile (fewer ~0.35us steps).
    if gen >= 7 and pl.cdiv(N, tm) * pl.cdiv(N, tn) < 2 and N >= 2 * _LANE:
        tm = _round_up(pl.cdiv(N, 2), _SUBLANE)

    gi, gj = pl.cdiv(N, tm), pl.cdiv(N, tn)

    cost = pl.CostEstimate(
        flops=2 * N * N * D,
        transcendentals=N * N,                 # one sigmoid per output element
        bytes_accessed=N * N * out_bytes
        + (N * D * in_bytes if resident else (1 + gi) * N * D * in_bytes),
    )

    if resident:
        # Pad input rows (cheap, <= grid*tile) so the in-kernel dynamic slices stay
        # in-bounds; the OUTPUT is never padded (no post-kernel N^2 slice).
        n_rows = max(gi * tm, gj * tn, N)
        if n_rows != N:
            x = jnp.pad(x, ((0, n_rows - N), (0, 0)))
        kernel = _make_resident_kernel(tm, tn, act_dtype)
        in_specs = [pl.BlockSpec(memory_space=pltpu.MemorySpace.VMEM)]  # one-time DMA, single copy
        operands = (x,)
    else:
        kernel = _make_streaming_kernel(act_dtype)
        in_specs = [
            pl.BlockSpec((tm, D), lambda i, j: (i, 0)),   # A row tile
            pl.BlockSpec((tn, D), lambda i, j: (j, 0)),   # B row tile (for inp.T)
        ]
        operands = (x, x)

    return pl.pallas_call(
        kernel,
        out_shape=jax.ShapeDtypeStruct((N, N), out_dtype),
        grid=(gi, gj),
        in_specs=in_specs,
        out_specs=pl.BlockSpec((tm, tn), lambda i, j: (i, j)),
        compiler_params=pltpu.CompilerParams(
            dimension_semantics=("parallel", "parallel"),
            vmem_limit_bytes=vmem_limit,
        ),
        cost_estimate=cost,
    )(*operands)


def _reference_f32(inp):
    return jax.nn.sigmoid(inp @ inp.T)


def _reference_matched(inp, compute_dtype=jnp.bfloat16):
    xb = inp.astype(compute_dtype)
    logits = lax.dot_general(xb, xb, dimension_numbers=(((1,), (1,)), ((), ())),
                             preferred_element_type=jnp.float32)
    return jax.nn.sigmoid(logits)


if __name__ == "__main__":
    key = jax.random.PRNGKey(0)
    N, D = 256, 64   # small latent node-embedding shape implied by the VGRNN decoder
    inp = jax.random.normal(key, (N, D), dtype=jnp.float32)

    ref_matched = _reference_matched(inp)
    ref_f32 = _reference_f32(inp)

    # 1) Default path: resident x, f32 output (PyTorch-equivalent output dtype).
    out = jax.block_until_ready(inner_product_decoder(inp))
    assert out.shape == (N, N) and out.dtype == jnp.float32
    assert jnp.allclose(out, ref_matched, atol=1e-4, rtol=1e-4), \
        "mismatch vs matched-precision reference"
    assert jnp.allclose(out, ref_f32, atol=1e-1), "mismatch vs f32 reference (sanity)"

    # 2) bf16 output (halves the dominant N^2 writeback; bf16 EUP sigmoid on v6e/v7x).
    out_bf16 = jax.block_until_ready(
        inner_product_decoder(inp, out_dtype=jnp.bfloat16))
    assert out_bf16.dtype == jnp.bfloat16
    assert jnp.allclose(out_bf16.astype(jnp.float32), ref_matched, atol=2e-2), \
        "bf16-output path mismatch"

    # 3) Streaming (non-resident) path, exercised at small shape for coverage.
    out_stream = jax.block_until_ready(inner_product_decoder(inp, resident=False))
    assert jnp.allclose(out_stream, ref_matched, atol=1e-4, rtol=1e-4), \
        "streaming path mismatch"

    print("KERNEL_OK")
</pallas_src>

<mosaic_0001>
module attributes {stable_mosaic.version = 11 : i64} {
  func.func @kernel(%arg0: i32, %arg1: i32, %arg2: memref<256x64xbf16, #tpu.memory_space<vmem>>, %arg3: memref<128x256xf32, #tpu.memory_space<vmem>>) attributes {dimension_semantics = [#tpu.dimension_semantics<parallel>, #tpu.dimension_semantics<parallel>], iteration_bounds = array<i64: 2, 1>, scalar_prefetch = 0 : i64, scratch_operands = 0 : i64, tpu.core_type = #tpu.core_type<tc>, window_params = [{pipeline_mode = #tpu.pipeline_mode<synchronous>, transform_indices = @transform_0, window_bounds = array<i64: 256, 64>}, {transform_indices = @transform_1, window_bounds = array<i64: 128, 256>}]} {
    %c128_i32 = arith.constant 128 : i32
    %0 = arith.muli %arg0, %c128_i32 : i32
    %1 = tpu.assume_multiple %0, 128 : i32
    %2 = arith.index_cast %1 : i32 to index
    %c0 = arith.constant 0 : index
    %3 = vector.load %arg2[%2, %c0] : memref<256x64xbf16, #tpu.memory_space<vmem>>, vector<128x64xbf16>
    %c256_i32 = arith.constant 256 : i32
    %4 = arith.muli %arg1, %c256_i32 : i32
    %5 = tpu.assume_multiple %4, 128 : i32
    %6 = arith.index_cast %5 : i32 to index
    %c0_0 = arith.constant 0 : index
    %7 = vector.load %arg2[%6, %c0_0] : memref<256x64xbf16, #tpu.memory_space<vmem>>, vector<256x64xbf16>
    %cst = arith.constant dense<0.000000e+00> : vector<128x256xf32>
    %8 = tpu.matmul %3, %7, %cst {dimension_numbers = #tpu.dot_dimension_numbers<[1], [1], [0], [0], [0, 0, 1, 0], [], []>} : vector<128x64xbf16>, vector<256x64xbf16>, vector<128x256xf32> -> vector<128x256xf32>
    %9 = arith.negf %8 : vector<128x256xf32>
    %10 = math.exp %9 : vector<128x256xf32>
    %cst_1 = arith.constant 1.000000e+00 : f32
    %11 = vector.broadcast %cst_1 : f32 to vector<128x256xf32>
    %12 = arith.addf %11, %10 : vector<128x256xf32>
    %13 = arith.divf %11, %12 : vector<128x256xf32>
    %c0_2 = arith.constant 0 : index
    %c0_3 = arith.constant 0 : index
    %14 = vector.load %arg3[%c0_2, %c0_3] : memref<128x256xf32, #tpu.memory_space<vmem>>, vector<128x256xf32>
    tpu.vector_store %arg3[%c0_2, %c0_3], %13 {strides = array<i32>} : memref<128x256xf32, #tpu.memory_space<vmem>>, vector<128x256xf32>,
    return
  }
  func.func @transform_0(%arg0: i32, %arg1: i32) -> (i32, i32) {
    %c0_i32 = arith.constant 0 : i32
    %c0_i32_0 = arith.constant 0 : i32
    %c0_i32_1 = arith.constant 0 : i32
    return %c0_i32, %c0_i32_0 : i32, i32
  }
  func.func @transform_1(%arg0: i32, %arg1: i32) -> (i32, i32) {
    %c0_i32 = arith.constant 0 : i32
    return %arg0, %arg1 : i32, i32
  }
}

</mosaic_0001>

<bundles_post_ra>
// kernel: tpu_custom_call.1
= control target key start
LH: loop header
LB: loop body
LE: loop exit
PB: predicated region body
PF: predicated region fallthrough
CT: control target
= control target key end

     0   :  { %6 = vsyncpa [#allocation3], 0  ;;  %s1502_s0 = inlined_call_operand.vmem [shape: bf16[256,64], index: 0, kind: input, shape index: {}]   ;;  %s1503_s1 = inlined_call_operand.hbm [shape: f32[256,256], index: 1, kind: output, shape index: {}]  }
   0x1   :  { %8 = vsyncpa [#allocation3 + $0x1], 0  ;;  %s1227_s6 = smov 0   ;;  %s1229_s7 = smov 0  }
   0x2   :  { %s1231_s8 = smov 0   ;;  %s1233_s9 = smov 0  }
   0x3   :  { %s1235_s10 = smov 0   ;;  %s1237_s11 = smov 0  }
   0x4 LB: > { %s782_s12 = sadd.s32 4294967295, %s1212_s11   ;;  %s783_s13 = sadd.s32 4294967294, %s1212_s11   ;;  %s1212_s11 = sphi %s1237_s11, %s14_s11   ;;  %s1208_s10 = sphi %s1235_s10, %s1510_s10   ;;  %s1204_s9 = sphi %s1233_s9, %s1509_s9   ;;  %s1200_s8 = sphi %s1231_s8, %s1508_s8   ;;  %s1196_s7 = sphi %s1229_s7, %s1507_s7   ;;  %s1192_s6 = sphi %s1227_s6, %s1506_s6  }
   0x5   : > { %s26_s14 = sadd.s32 1, %s1208_s10  ;;  %s56_s15 = sadd.s32 1, %s1200_s8 }
   0x6   : > { %p28_p0 = scmp.ge.s32.totalorder %s26_s14, 2  ;;  %p66_p1 = scmp.ne.s32.totalorder %s1200_s8, %s1196_s7 }
   0x7   : > { %p67_p2 = scmp.eq.s32.totalorder %s782_s12, 1  ;;  %p72_p3 = scmp.ne.s32.totalorder %s1196_s7, %s1192_s6 }
   0x8   : > { %s1512_s14 = smov (%p28_p0, %s26_s14), 0  ;;  %p73_p5 = scmp.eq.s32.totalorder %s783_s13, 1 }
   0x9   : > { %p1267_p4 = por %p67_p2, %p66_p1  ;;  %s51_s17 = ssub.s32 %s1208_s10, %s1512_s14 }
   0xa   : > { %p785_p6 = scmp.ge.s32.totalorder %s1212_s11, 1  ;;  %p54_p7 = scmp.eq.s32.totalorder %s51_s17, 0 }
   0xb   : > { %p1274_p8 = por %p73_p5, %p72_p3  ;;  %p94_p9 = scmp.lt.s32.totalorder %s1212_s11, 3 }
   0xc   : > { %s1280_s19 = scalar_select %p54_p7, %s1200_s8, %s56_s15  }
   0xd   : > { %p95_p10 = pnand %p785_p6, %p94_p9 }
   0xe   : > { %v982_v0 = vld [vmem:[%s1502_s0 + $0x40] sm:$0xff] (!%p95_p10)   ;;  %vm290_vm0 = vcmask (!%p95_p10), 523264   ;;  %v984_v2 = vld [vmem:[%s1502_s0 + $0x48] sm:$0xff] (!%p95_p10)   ;;  %s787_s26 = sshll.u32 (!%p95_p10), %s1204_s9, 7  ;;  %v986_v6 = vld [vmem:[%s1502_s0 + $0x50] sm:$0xff] (!%p95_p10)   ;;  %s860_s23 = sshll.u32 (!%p95_p10), %s1204_s9, 12 }
   0xf   : > { %98 = sbr.rel (%p95_p10) target bundleno = 392 (0x188), region = 24  ;;  %v983_v1 = vld [vmem:[%s1502_s0] sm:$0xff] (!%p95_p10)   ;;  %909 = vmatprep.subr.msk.bf16.mxu0 (!%p95_p10), %vm290_vm0, %v982_v0  ;;  %910 = vmatprep.subr.msk.bf16.mxu1 (!%p95_p10), %vm290_vm0, %v982_v0  ;;  %v985_v4 = vld [vmem:[%s1502_s0 + $0x8] sm:$0xff] (!%p95_p10)   ;;  %s113_s29 = sshra.s32 (!%p95_p10), %s787_s26, 3  ;;  %v987_v7 = vld [vmem:[%s1502_s0 + $0x10] sm:$0xff] (!%p95_p10)  }
  0x10   : > { %v316_v3 = vsel (!%p95_p10), %vm290_vm0, %v983_v1, 0  ;;  %v319_v5 = vsel (!%p95_p10), %vm290_vm0, %v985_v4, 0  ;;  %s788_s3 = sshll.u32 (!%p95_p10), %s113_s29, 2  ;;  %v988_v8 = vld [vmem:[%s1502_s0 + $0x58] sm:$0xff] (!%p95_p10)   ;;  %v322_v10 = vsel (!%p95_p10), %vm290_vm0, %v987_v7, 0  ;;  %v990_v14 = vld [vmem:[%s1502_s0 + $0x60] sm:$0xff] (!%p95_p10)   ;;  %s1447_s27 = scalar_lea.hbm (!%p95_p10), %s1503_s1, %s860_s23 }
  0x11   : > { %862 = vmatpush3.bf16.xpose.msra.mxu0 (!%p95_p10), %v316_v3  ;;  %901 = vmatpush3.bf16.xpose.msra.mxu1 (!%p95_p10), %v316_v3  ;;  %s1312_s15 = scalar_lea.vmem (!%p95_p10), %s1502_s0, %s788_s3  ;;  %v989_v12 = vld [vmem:[%s1502_s0 + $0x18] sm:$0xff] (!%p95_p10)   ;;  %v991_v15 = vld [vmem:[%s1502_s0 + $0x20] sm:$0xff] (!%p95_p10)   ;;  %v992_v17 = vld [vmem:[%s1502_s0 + $0x68] sm:$0xff] (!%p95_p10)   ;;  %s1214_s29 = smov (!%p95_p10), [#allocation2]  }
  0x12   : > { %911 = vmatprep.subr.msk.bf16.mxu0 (!%p95_p10), %vm290_vm0, %v984_v2  ;;  %912 = vmatprep.subr.msk.bf16.mxu1 (!%p95_p10), %vm290_vm0, %v984_v2  ;;  %v998_v9 = vld [vmem:[%s1312_s15] sm:$0xff] (!%p95_p10)   ;;  %v325_v13 = vsel (!%p95_p10), %vm290_vm0, %v989_v12, 0  ;;  %v328_v16 = vsel (!%p95_p10), %vm290_vm0, %v991_v15, 0  ;;  %v993_v18 = vld [vmem:[%s1502_s0 + $0x28] sm:$0xff] (!%p95_p10)   ;;  %v994_v20 = vld [vmem:[%s1502_s0 + $0x70] sm:$0xff] (!%p95_p10)   ;;  %s1138_s30 = sshll.u32 (!%p95_p10), %s1214_s29, 4  ;;  %s1139_s30 = int_to_ptr.vmem [resolvable:$false] %s1138_s30 }
  0x13   : > { %v999_v11 = vld [vmem:[%s1312_s15 + $0x20] sm:$0xff] (!%p95_p10)   ;;  %877 = vmatprep.mubr.msk.bf16.mxu0 (!%p95_p10), %vm290_vm0, %v998_v9  ;;  %v331_v19 = vsel (!%p95_p10), %vm290_vm0, %v993_v18, 0  ;;  %v995_v21 = vld [vmem:[%s1502_s0 + $0x30] sm:$0xff] (!%p95_p10)   ;;  %v996_v23 = vld [vmem:[%s1502_s0 + $0x78] sm:$0xff] (!%p95_p10)   ;;  %s1140_s2 = scalar_lea.vmem (!%p95_p10), %s1139_s30, 8192 }
  0x14   : > { %885 = vmatprep.mubr.msk.bf16.mxu1 (!%p95_p10), %vm290_vm0, %v999_v11  ;;  %v334_v22 = vsel (!%p95_p10), %vm290_vm0, %v995_v21, 0  ;;  %v997_v24 = vld [vmem:[%s1502_s0 + $0x38] sm:$0xff] (!%p95_p10)   ;;  %v1000_v26 = vld [vmem:[%s1312_s15 + $0x8] sm:$0xff] (!%p95_p10)   ;;  %v1002_v28 = vld [vmem:[%s1312_s15 + $0x10] sm:$0xff] (!%p95_p10)  }
  0x15   : > { %v337_v25 = vsel (!%p95_p10), %vm290_vm0, %v997_v24, 0  ;;  %v1001_v27 = vld [vmem:[%s1312_s15 + $0x28] sm:$0xff] (!%p95_p10)   ;;  %v1003_v29 = vld [vmem:[%s1312_s15 + $0x30] sm:$0xff] (!%p95_p10)   ;;  %v1004_v30 = vld [vmem:[%s1312_s15 + $0x18] sm:$0xff] (!%p95_p10)  }
  0x16   : > { %v1005_v31 = vld [vmem:[%s1312_s15 + $0x38] sm:$0xff]   ;;  %s106_s15 = sand.u32 1, %s1196_s7  }
  0x17   : > { %s786_s21 = sshll.u32 %s106_s15, 8  ;;  %s1456_s9 = scalar_lea.sflag [#allocation3], %s106_s15 }
  0x18   : > { %s1397_s22 = scalar_lea.vmem [#allocation2], %s786_s21 }
  0x19   : > { %864 = vmatpush3.bf16.xpose.msra.mxu0 %v319_v5  ;;  %902 = vmatpush3.bf16.xpose.msra.mxu1 %v319_v5  ;;  %s717_s24 = sshll.u32 %s1397_s22, 4  ;;  %s1449_s24 = int_to_ptr.vmem [resolvable:$true] %s717_s24 }
  0x1a   : > { %913 = vmatprep.subr.msk.bf16.mxu0 %vm290_vm0, %v986_v6  ;;  %914 = vmatprep.subr.msk.bf16.mxu1 %vm290_vm0, %v986_v6  ;;  %s1134_s28 = scalar_lea.vmem %s1449_s24, 4096  ;;  %p1141_p0 = scmp.lt.s32.totalorder %s1449_s24, %s1139_s30 }
  0x1b   : > { %p1135_p11 = scmp.ne.s32.totalorder %s1449_s24, %s1134_s28  ;;  %p1142_p1 = scmp.lt.s32.totalorder %s1140_s2, %s1134_s28 }
  0x1d   : > { %p1136_p12 = pnand %p1135_p11, %p1267_p4  ;;  %p1143_p2 = por %p1142_p1, %p1141_p0 }
  0x1f   : > { %p1137_p13 = pneg %p1136_p12 }
  0x21   : > { %866 = vmatpush3.bf16.xpose.msra.mxu0 %v322_v10  ;;  %903 = vmatpush3.bf16.xpose.msra.mxu1 %v322_v10  ;;  %p1144_p3 = pnand %p1143_p2, %p1137_p13 }
  0x22   : > { %915 = vmatprep.subr.msk.bf16.mxu0 %vm290_vm0, %v988_v8  ;;  %916 = vmatprep.subr.msk.bf16.mxu1 %vm290_vm0, %v988_v8 }
  0x29   : > { %868 = vmatpush3.bf16.xpose.msra.mxu0 %v325_v13  ;;  %904 = vmatpush3.bf16.xpose.msra.mxu1 %v325_v13 }
  0x2a   : > { %917 = vmatprep.subr.msk.bf16.mxu0 %vm290_vm0, %v990_v14  ;;  %918 = vmatprep.subr.msk.bf16.mxu1 %vm290_vm0, %v990_v14 }
  0x31   : > { %870 = vmatpush3.bf16.xpose.msra.mxu0 %v328_v16  ;;  %905 = vmatpush3.bf16.xpose.msra.mxu1 %v328_v16 }
  0x32   : > { %919 = vmatprep.subr.msk.bf16.mxu0 %vm290_vm0, %v992_v17  ;;  %920 = vmatprep.subr.msk.bf16.mxu1 %vm290_vm0, %v992_v17 }
  0x39   : > { %872 = vmatpush3.bf16.xpose.msra.mxu0 %v331_v19  ;;  %906 = vmatpush3.bf16.xpose.msra.mxu1 %v331_v19 }
  0x3a   : > { %921 = vmatprep.subr.msk.bf16.mxu0 %vm290_vm0, %v994_v20  ;;  %922 = vmatprep.subr.msk.bf16.mxu1 %vm290_vm0, %v994_v20 }
  0x41   : > { %874 = vmatpush3.bf16.xpose.msra.mxu0 %v334_v22  ;;  %907 = vmatpush3.bf16.xpose.msra.mxu1 %v334_v22 }
  0x42   : > { %923 = vmatprep.subr.msk.bf16.mxu0 %vm290_vm0, %v996_v23  ;;  %924 = vmatprep.subr.msk.bf16.mxu1 %vm290_vm0, %v996_v23 }
  0x49   : > { %876 = vmatpush3.bf16.xpose.msra.mxu0 %v337_v25  ;;  %908 = vmatpush3.bf16.xpose.msra.mxu1 %v337_v25 }
  0x50   : > { %878 = vmatmul.mubr.msk.bf16.vlgmr.msra.gmra.mrb[0].mxu0 %vm290_vm0, %v998_v9  ;;  %886 = vmatmul.mubr.msk.bf16.vlgmr.msra.gmra.mrb[0].mxu1 %vm290_vm0, %v999_v11 }
  0x51   : > { %879 = vmatprep.mubr.msk.bf16.mxu0 %vm290_vm0, %v1000_v26  ;;  %887 = vmatprep.mubr.msk.bf16.mxu1 %vm290_vm0, %v1001_v27 }
  0x58   : > { %880 = vmatmul.mubr.msk.bf16.gmra.mrb[4].mxu0 %vm290_vm0, %v1000_v26  ;;  %888 = vmatmul.mubr.msk.bf16.gmra.mrb[4].mxu1 %vm290_vm0, %v1001_v27 }
  0x59   : > { %881 = vmatprep.mubr.msk.bf16.mxu0 %vm290_vm0, %v1002_v28  ;;  %889 = vmatprep.mubr.msk.bf16.mxu1 %vm290_vm0, %v1003_v29 }
  0x60   : > { %882 = vmatmul.mubr.msk.bf16.gmra.mrb[8].mxu0 %vm290_vm0, %v1002_v28  ;;  %890 = vmatmul.mubr.msk.bf16.gmra.mrb[8].mxu1 %vm290_vm0, %v1003_v29 }
  0x61   : > { %883 = vmatprep.mubr.msk.bf16.mxu0 %vm290_vm0, %v1004_v30  ;;  %891 = vmatprep.mubr.msk.bf16.mxu1 %vm290_vm0, %v1005_v31 }
  0x68   : > { %884 = vmatmul.mubr.msk.bf16.gmra.mrb[12].mxu0 %vm290_vm0, %v1004_v30  ;;  %892 = vmatmul.mubr.msk.bf16.gmra.mrb[12].mxu1 %vm290_vm0, %v1005_v31 }
 0x123   : > { %v397_v32 = vpop.f32.mrb[0].mxu0  ;;  %v437_v33 = vpop.f32.mrb[0].mxu1 }
 0x124   : > { %v821_v34 = vmul.f32 -1.442695, %v397_v32  ;;  %v837_v35 = vmul.f32 -1.442695, %v437_v33  ;;  %v399_v36 = vpop.f32.mrb[1].mxu0  ;;  %v439_v37 = vpop.f32.mrb[1].mxu1 }
 0x125   : > { %v822_v38 = vmul.f32 -1.442695, %v399_v36  ;;  %v838_v39 = vmul.f32 -1.442695, %v439_v37  ;;  %v401_v40 = vpop.f32.mrb[2].mxu0  ;;  %v441_v41 = vpop.f32.mrb[2].mxu1 }
 0x126   : > { %1006 = vpow2.f32 %v821_v34  ;;  %v823_v42 = vmul.f32 -1.442695, %v401_v40  ;;  %v403_v43 = vpop.f32.mrb[3].mxu0  ;;  %v443_v44 = vpop.f32.mrb[3].mxu1  ;;  %v839_v45 = vmul.f32 -1.442695, %v441_v41 }
 0x127   : > { %1008 = vpow2.f32 %v837_v35  ;;  %v824_v46 = vmul.f32 -1.442695, %v403_v43  ;;  %v840_v47 = vmul.f32 -1.442695, %v443_v44 }
 0x128   : > { %1010 = vpow2.f32 %v822_v38 }
 0x129   : > { %1012 = vpow2.f32 %v838_v39 }
 0x12a   : > { %1014 = vpow2.f32 %v823_v42 }
 0x12b   : > { %1016 = vpow2.f32 %v839_v45  ;;  %v407_v48 = vpop.f32.mrb[4].mxu0  ;;  %v447_v49 = vpop.f32.mrb[4].mxu1 }
 0x12c   : > { %1018 = vpow2.f32 %v824_v46  ;;  %v825_v50 = vmul.f32 -1.442695, %v407_v48  ;;  %v841_v51 = vmul.f32 -1.442695, %v447_v49  ;;  %v409_v52 = vpop.f32.mrb[5].mxu0  ;;  %v449_v53 = vpop.f32.mrb[5].mxu1 }
 0x12d   : > { %1020 = vpow2.f32 %v840_v47  ;;  %v826_v54 = vmul.f32 -1.442695, %v409_v52  ;;  %v842_v55 = vmul.f32 -1.442695, %v449_v53  ;;  %v411_v56 = vpop.f32.mrb[6].mxu0  ;;  %v451_v57 = vpop.f32.mrb[6].mxu1 }
 0x12e   : > { %1022 = vpow2.f32 %v825_v50  ;;  %v827_v58 = vmul.f32 -1.442695, %v411_v56  ;;  %v413_v59 = vpop.f32.mrb[7].mxu0  ;;  %v1384_v60 = vpop.f32.mrb[7].mxu1  ;;  %v843_v32 = vmul.f32 -1.442695, %v451_v57 }
 0x12f   : > { %1024 = vpow2.f32 %v841_v51  ;;  %v828_v36 = vmul.f32 -1.442695, %v413_v59  ;;  %v844_v40 = vmul.f32 -1.442695, %v1384_v60 }
 0x130   : > { %v1007_v61 = vpop.eup %1006  ;;  %1026 = vpow2.f32 %v826_v54 }
 0x131   : > { %v1009_v62 = vpop.eup %1008  ;;  %v572_v63 = vadd.f32 1.0, %v1007_v61  ;;  %1028 = vpow2.f32 %v842_v55 }
 0x132   : > { %v1011_v0 = vpop.eup %1010  ;;  %v588_v1 = vadd.f32 1.0, %v1009_v62  ;;  %1030 = vpow2.f32 %v827_v58 }
 0x133   : > { %v1013_v2 = vpop.eup %1012  ;;  %1032 = vrcp.f32 %v572_v63  ;;  %v573_v3 = vadd.f32 1.0, %v1011_v0  ;;  %v417_v4 = vpop.f32.mrb[8].mxu0 }
 0x134   : > { %v457_v5 = vpop.f32.mrb[8].mxu1  ;;  %v1015_v6 = vpop.eup %1014  ;;  %1034 = vrcp.f32 %v588_v1  ;;  %v589_v7 = vadd.f32 1.0, %v1013_v2  ;;  %v829_v44 = vmul.f32 -1.442695, %v417_v4 }
 0x135   : > { %v419_v8 = vpop.f32.mrb[9].mxu0  ;;  %v1017_v9 = vpop.eup %1016  ;;  %1036 = vrcp.f32 %v573_v3  ;;  %v574_v10 = vadd.f32 1.0, %v1015_v6  ;;  %v845_v47 = vmul.f32 -1.442695, %v457_v5 }
 0x136   : > { %v459_v11 = vpop.f32.mrb[9].mxu1  ;;  %v421_v12 = vpop.f32.mrb[10].mxu0  ;;  %1038 = vrcp.f32 %v589_v7  ;;  %v590_v14 = vadd.f32 1.0, %v1017_v9  ;;  %v830_v49 = vmul.f32 -1.442695, %v419_v8 }
 0x137   : > { %v1019_v13 = vpop.eup %1018  ;;  %v461_v15 = vpop.f32.mrb[10].mxu1  ;;  %1040 = vrcp.f32 %v574_v10  ;;  %v846_v51 = vmul.f32 -1.442695, %v459_v11  ;;  %v831_v53 = vmul.f32 -1.442695, %v421_v12 }
 0x138   : > { %v1021_v16 = vpop.eup %1020  ;;  %v575_v17 = vadd.f32 1.0, %v1019_v13  ;;  %v423_v18 = vpop.f32.mrb[11].mxu0  ;;  %1042 = vrcp.f32 %v590_v14  ;;  %v847_v55 = vmul.f32 -1.442695, %v461_v15 }
 0x139   : > { %v1387_v19 = vpop.f32.mrb[11].mxu1  ;;  %v1023_v20 = vpop.eup %1022  ;;  %v591_v21 = vadd.f32 1.0, %v1021_v16  ;;  %v832_v57 = vmul.f32 -1.442695, %v423_v18 }
 0x13a   : > { %v1025_v22 = vpop.eup %1024  ;;  %1044 = vrcp.f32 %v575_v17  ;;  %v576_v23 = vadd.f32 1.0, %v1023_v20  ;;  %v848_v59 = vmul.f32 -1.442695, %v1387_v19 }
 0x13b   : > { %v1027_v24 = vpop.eup %1026  ;;  %1046 = vrcp.f32 %v591_v21  ;;  %v592_v25 = vadd.f32 1.0, %v1025_v22  ;;  %v427_v28 = vpop.f32.mrb[12].mxu0 }
 0x13c   : > { %v1029_v26 = vpop.eup %1028  ;;  %1048 = vrcp.f32 %v576_v23  ;;  %v577_v27 = vadd.f32 1.0, %v1027_v24  ;;  %v467_v29 = vpop.f32.mrb[12].mxu1  ;;  %v833_v61 = vmul.f32 -1.442695, %v427_v28 }
 0x13d   : > { %v1031_v30 = vpop.eup %1030  ;;  %1050 = vrcp.f32 %v592_v25  ;;  %v593_v31 = vadd.f32 1.0, %v1029_v26  ;;  %v1391_v33 = vpop.f32.mrb[13].mxu0  ;;  %v849_v63 = vmul.f32 -1.442695, %v467_v29 }
 0x13e   : > { %v1033_v34 = vpop.eup %1032  ;;  %1052 = vrcp.f32 %v577_v27  ;;  %v578_v35 = vadd.f32 1.0, %v1031_v30  ;;  %v1393_v37 = vpop.f32.mrb[13].mxu1  ;;  %v834_v26 = vmul.f32 -1.442695, %v1391_v33 }
 0x13f   : > { %v1395_v38 = vpop.f32.mrb[14].mxu0  ;;  %v1035_v39 = vpop.eup %1034  ;;  %668 = vst [vmem:[%s1397_s22] sm:$0xff] %v1033_v34  ;;  %1054 = vrcp.f32 %v593_v31  ;;  %v850_v29 = vmul.f32 -1.442695, %v1393_v37 }
 0x140   : > { %v1401_v41 = vpop.f32.mrb[14].mxu1  ;;  %v1403_v42 = vpop.f32.mrb[15].mxu0  ;;  %684 = vst [vmem:[%s1397_s22 + $0x80] sm:$0xff] %v1035_v39  ;;  %1056 = vrcp.f32 %v578_v35  ;;  %v835_v31 = vmul.f32 -1.442695, %v1395_v38 }
 0x141   : > { %v1037_v43 = vpop.eup %1036  ;;  %v1406_v45 = vpop.f32.mrb[15].mxu1  ;;  %1058 = vpow2.f32 %v843_v32  ;;  %v851_v34 = vmul.f32 -1.442695, %v1401_v41  ;;  %v836_v35 = vmul.f32 -1.442695, %v1403_v42 }
 0x142   : > { %v1039_v46 = vpop.eup %1038  ;;  %669 = vst [vmem:[%s1397_s22 + $0x8] sm:$0xff] %v1037_v43  ;;  %1060 = vpow2.f32 %v828_v36  ;;  %v852_v37 = vmul.f32 -1.442695, %v1406_v45 }
 0x143   : > { %v1041_v48 = vpop.eup %1040  ;;  %685 = vst [vmem:[%s1397_s22 + $0x88] sm:$0xff] %v1039_v46  ;;  %1062 = vpow2.f32 %v844_v40 }
 0x144   : > { %v1043_v50 = vpop.eup %1042  ;;  %670 = vst [vmem:[%s1397_s22 + $0x10] sm:$0xff] %v1041_v48  ;;  %1064 = vpow2.f32 %v829_v44 }
 0x145   : > { %v1045_v52 = vpop.eup %1044  ;;  %686 = vst [vmem:[%s1397_s22 + $0x90] sm:$0xff] %v1043_v50  ;;  %1066 = vpow2.f32 %v845_v47 }
 0x146   : > { %v1047_v54 = vpop.eup %1046  ;;  %671 = vst [vmem:[%s1397_s22 + $0x18] sm:$0xff] %v1045_v52  ;;  %1068 = vpow2.f32 %v830_v49 }
 0x147   : > { %v1049_v56 = vpop.eup %1048  ;;  %687 = vst [vmem:[%s1397_s22 + $0x98] sm:$0xff] %v1047_v54  ;;  %1070 = vpow2.f32 %v846_v51 }
 0x148   : > { %v1051_v58 = vpop.eup %1050  ;;  %672 = vst [vmem:[%s1397_s22 + $0x20] sm:$0xff] %v1049_v56  ;;  %1072 = vpow2.f32 %v831_v53 }
 0x149   : > { %v1053_v60 = vpop.eup %1052  ;;  %688 = vst [vmem:[%s1397_s22 + $0xa0] sm:$0xff] %v1051_v58  ;;  %1074 = vpow2.f32 %v847_v55 }
 0x14a   : > { %v1055_v62 = vpop.eup %1054  ;;  %673 = vst [vmem:[%s1397_s22 + $0x28] sm:$0xff] %v1053_v60  ;;  %1076 = vpow2.f32 %v832_v57 }
 0x14b   : > { %v1057_v0 = vpop.eup %1056  ;;  %689 = vst [vmem:[%s1397_s22 + $0xa8] sm:$0xff] %v1055_v62  ;;  %1078 = vpow2.f32 %v848_v59 }
 0x14c   : > { %v1059_v1 = vpop.eup %1058  ;;  %674 = vst [vmem:[%s1397_s22 + $0x30] sm:$0xff] %v1057_v0  ;;  %1080 = vpow2.f32 %v833_v61 }
 0x14d   : > { %v1061_v2 = vpop.eup %1060  ;;  %v594_v3 = vadd.f32 1.0, %v1059_v1  ;;  %1082 = vpow2.f32 %v849_v63 }
 0x14e   : > { %v1063_v4 = vpop.eup %1062  ;;  %v579_v5 = vadd.f32 1.0, %v1061_v2 }
 0x14f   : > { %v1065_v6 = vpop.eup %1064  ;;  %1084 = vrcp.f32 %v594_v3  ;;  %v595_v7 = vadd.f32 1.0, %v1063_v4 }
 0x150   : > { %v1067_v8 = vpop.eup %1066  ;;  %1086 = vrcp.f32 %v579_v5  ;;  %v580_v9 = vadd.f32 1.0, %v1065_v6 }
 0x151   : > { %v1069_v10 = vpop.eup %1068  ;;  %1088 = vrcp.f32 %v595_v7  ;;  %v596_v11 = vadd.f32 1.0, %v1067_v8 }
 0x152   : > { %v1071_v12 = vpop.eup %1070  ;;  %1090 = vrcp.f32 %v580_v9  ;;  %v581_v13 = vadd.f32 1.0, %v1069_v10 }
 0x153   : > { %v1073_v14 = vpop.eup %1072  ;;  %1092 = vrcp.f32 %v596_v11  ;;  %v597_v15 = vadd.f32 1.0, %v1071_v12 }
 0x154   : > { %v1075_v16 = vpop.eup %1074  ;;  %1094 = vrcp.f32 %v581_v13  ;;  %v582_v17 = vadd.f32 1.0, %v1073_v14 }
 0x155   : > { %v1077_v18 = vpop.eup %1076  ;;  %1096 = vrcp.f32 %v597_v15  ;;  %v598_v19 = vadd.f32 1.0, %v1075_v16 }
 0x156   : > { %v1079_v20 = vpop.eup %1078  ;;  %1098 = vrcp.f32 %v582_v17  ;;  %v583_v21 = vadd.f32 1.0, %v1077_v18 }
 0x157   : > { %v1081_v22 = vpop.eup %1080  ;;  %1100 = vrcp.f32 %v598_v19  ;;  %v599_v23 = vadd.f32 1.0, %v1079_v20 }
 0x158   : > { %v1083_v24 = vpop.eup %1082  ;;  %1102 = vrcp.f32 %v583_v21  ;;  %v584_v25 = vadd.f32 1.0, %v1081_v22 }
 0x159   : > { %v1085_v27 = vpop.eup %1084  ;;  %1104 = vrcp.f32 %v599_v23  ;;  %v600_v28 = vadd.f32 1.0, %v1083_v24 }
 0x15a   : > { %v1087_v30 = vpop.eup %1086  ;;  %690 = vst [vmem:[%s1397_s22 + $0xb0] sm:$0xff] %v1085_v27  ;;  %1106 = vrcp.f32 %v584_v25 }
 0x15b   : > { %v1089_v32 = vpop.eup %1088  ;;  %675 = vst [vmem:[%s1397_s22 + $0x38] sm:$0xff] %v1087_v30  ;;  %1108 = vrcp.f32 %v600_v28 }
 0x15c   : > { %v1091_v33 = vpop.eup %1090  ;;  %691 = vst [vmem:[%s1397_s22 + $0xb8] sm:$0xff] %v1089_v32  ;;  %1110 = vpow2.f32 %v834_v26 }
 0x15d   : > { %v1093_v36 = vpop.eup %1092  ;;  %676 = vst [vmem:[%s1397_s22 + $0x40] sm:$0xff] %v1091_v33  ;;  %1112 = vpow2.f32 %v850_v29 }
 0x15e   : > { %v1095_v38 = vpop.eup %1094  ;;  %692 = vst [vmem:[%s1397_s22 + $0xc0] sm:$0xff] %v1093_v36  ;;  %1114 = vpow2.f32 %v835_v31 }
 0x15f   : > { %v1097_v39 = vpop.eup %1096  ;;  %677 = vst [vmem:[%s1397_s22 + $0x48] sm:$0xff] %v1095_v38  ;;  %1116 = vpow2.f32 %v851_v34 }
 0x160   : > { %v1099_v40 = vpop.eup %1098  ;;  %693 = vst [vmem:[%s1397_s22 + $0xc8] sm:$0xff] %v1097_v39  ;;  %1118 = vpow2.f32 %v836_v35 }
 0x161   : > { %v1101_v41 = vpop.eup %1100  ;;  %678 = vst [vmem:[%s1397_s22 + $0x50] sm:$0xff] %v1099_v40  ;;  %1120 = vpow2.f32 %v852_v37 }
 0x162   : > { %v1103_v42 = vpop.eup %1102  ;;  %694 = vst [vmem:[%s1397_s22 + $0xd0] sm:$0xff] %v1101_v41 }
 0x163   : > { %v1105_v43 = vpop.eup %1104  ;;  %679 = vst [vmem:[%s1397_s22 + $0x58] sm:$0xff] %v1103_v42 }
 0x164   : > { %v1107_v44 = vpop.eup %1106  ;;  %695 = vst [vmem:[%s1397_s22 + $0xd8] sm:$0xff] %v1105_v43 }
 0x165   : > { %v1109_v45 = vpop.eup %1108  ;;  %680 = vst [vmem:[%s1397_s22 + $0x60] sm:$0xff] %v1107_v44 }
 0x166   : > { %v1111_v46 = vpop.eup %1110  ;;  %696 = vst [vmem:[%s1397_s22 + $0xe0] sm:$0xff] %v1109_v45 }
 0x167   : > { %v1113_v47 = vpop.eup %1112  ;;  %v585_v48 = vadd.f32 1.0, %v1111_v46 }
 0x168   : > { %v1115_v49 = vpop.eup %1114  ;;  %v601_v50 = vadd.f32 1.0, %v1113_v47 }
 0x169   : > { %v1117_v51 = vpop.eup %1116  ;;  %1122 = vrcp.f32 %v585_v48  ;;  %v586_v52 = vadd.f32 1.0, %v1115_v49 }
 0x16a   : > { %v1119_v53 = vpop.eup %1118  ;;  %1124 = vrcp.f32 %v601_v50  ;;  %v602_v54 = vadd.f32 1.0, %v1117_v51 }
 0x16b   : > { %v1121_v55 = vpop.eup %1120  ;;  %1126 = vrcp.f32 %v586_v52  ;;  %v587_v56 = vadd.f32 1.0, %v1119_v53 }
 0x16c   : > { %1128 = vrcp.f32 %v602_v54  ;;  %v603_v57 = vadd.f32 1.0, %v1121_v55 }
 0x16d   : > { %1130 = vrcp.f32 %v587_v56 }
 0x16e   : > { %1132 = vrcp.f32 %v603_v57 }
 0x173   : > { %v1123_v58 = vpop.eup %1122 }
 0x174   : > { %v1125_v59 = vpop.eup %1124  ;;  %681 = vst [vmem:[%s1397_s22 + $0x68] sm:$0xff] %v1123_v58 }
 0x175   : > { %v1127_v60 = vpop.eup %1126  ;;  %697 = vst [vmem:[%s1397_s22 + $0xe8] sm:$0xff] %v1125_v59 }
 0x176   : > { %v1129_v61 = vpop.eup %1128  ;;  %682 = vst [vmem:[%s1397_s22 + $0x70] sm:$0xff] %v1127_v60 }
 0x177   : > { %v1131_v62 = vpop.eup %1130  ;;  %698 = vst [vmem:[%s1397_s22 + $0xf0] sm:$0xff] %v1129_v61 }
 0x178   : > { %v1133_v63 = vpop.eup %1132  ;;  %683 = vst [vmem:[%s1397_s22 + $0x78] sm:$0xff] %v1131_v62 }
 0x179   : > { %699 = vst [vmem:[%s1397_s22 + $0xf8] sm:$0xff] %v1133_v63 }
 0x17a   : > { %1147 = shalt.err (!%p1144_p3)
}
 0x17b   : > { %s1148_s3 = scalar_lea.hbm %s1447_s27, 4096  ;;  %s1152_s12 = scalar_lea.hbm %s1503_s1, 8192 }
 0x17c   : > { %p1149_p5 = scmp.ne.s32.totalorder %s1447_s27, %s1148_s3  ;;  %p1153_p9 = scmp.lt.u32.totalorder %s1447_s27, %s1503_s1 }
 0x17d   : > { %p1154_p10 = scmp.lt.u32.totalorder %s1152_s12, %s1148_s3  ;;  %p1156_p12 = scmp.lt.u32.totalorder %s1148_s3, %s1447_s27 }
 0x17e   : > { %p1150_p6 = pnand %p1149_p5, %p1267_p4 }
 0x17f   : > { %p1155_p11 = por %p1154_p10, %p1153_p9 }
 0x180   : > { %p1151_p7 = pneg %p1150_p6 }
 0x181   : > { %p1157_p13 = por %p1156_p12, %p1155_p11 }
 0x183   : > { %p1158_p0 = pnand %p1157_p13, %p1151_p7 }
 0x185   : > { %1161 = shalt.err (!%p1158_p0)
}
 0x186   : > { %s1215_s20 = smov 256   ;;  %s1216_s15 = smov 16  }
 0x187   : > { %925 = dma.vmem_to_hbm [thread:$0]  (%p1267_p4), %s1449_s24, 4096, %s1447_s27, %s1456_s9, %s1215_s20, %s1215_s20, %s1216_s15  }
 0x188 PF: > { %p931_p1 = scmp.ge.s32.totalorder %s1212_s11, 2  ;;  %s732_s21 = sand.u32 1, %s1192_s6  }
 0x189   : > { %s733_s22 = scalar_lea.sflag [#allocation3], %s732_s21 }
 0x18a   : > { %p928_p2 = pnand %p931_p1, %p1274_p8 }
 0x18c   : > { %1187 = dma.done.wait (!%p928_p2), %s733_s22, 4096  }
 0x18d   : > { %1189 = vsyncadd (!%p928_p2), %s733_s22, 4294963200  ;;  %s14_s11 = sadd.s32 1, %s1212_s11   ;;  %s1506_s6 = smov %s1196_s7 }
 0x18e   : > { %p11_p3 = scmp.ge.s32.totalorder %s14_s11, 4   ;;  %s1507_s7 = smov %s1200_s8 }
 0x18f   : > { %s1508_s8 = smov %s1280_s19  ;;  %s1509_s9 = smov %s1208_s10 }
 0x190   : > { %s1510_s10 = smov %s1512_s14  ;;  %13 = sbr.rel (!%p11_p3) target bundleno = 4 (0x4), region = 58 }
 0x197   :  { %738 = vsyncpa [#allocation3], 1 }
 0x198   :  { %740 = vsyncpa [#allocation3 + $0x1], 1 }

</bundles_post_ra>
